<compile_context>
chip_gen: v7x
topology: tpu7x:2x2x1
jax: 0.10.0
libtpu: 0.0.40
codegen_flags: <defaults>
</compile_context>

<pallas_src>
import functools

import jax
import jax.numpy as jnp
from jax.experimental import pallas as pl
from jax.experimental.pallas import tpu as pltpu


def _round_up(a, b):
    return (a + b - 1) // b * b


def _sublane(dtype):
    # sublane multiple for the second-minor dim: 8 (f32), 16 (bf16), 32 (int8/fp8)
    return max(8, 32 // jnp.dtype(dtype).itemsize)


# ----------------------------- kernels --------------------------------------


def _d2s_kernel_wide(x_ref, s_ref, o_ref, *, r, H, W, cblk):
    """Aligned path ((W*r) % 128 == 0).

    x_ref: (cblk, r, r, H, W)   input sub-channels
    s_ref: (r, W, W*r)          per-j one-hot scatters (shared across i)
    o_ref: (cblk*H, r*r*W)      lane-dense view of the up-sampled output
    """
    M = cblk * H
    WR = W * r
    for i in range(r):                       # r is small & static -> unrolled
        acc = None
        for j in range(r):
            lhs = x_ref[:, i, j, :, :].reshape(M, W)   # leading-dim collapse, free
            if lhs.dtype != s_ref.dtype:
                lhs = lhs.astype(s_ref.dtype)
            term = jnp.dot(lhs, s_ref[j], preferred_element_type=jnp.float32)
            acc = term if acc is None else acc + term  # disjoint lanes, only r-way
        # ReLU activation; exact because each lane holds exactly one routed value.
        o_ref[:, pl.ds(i * WR, WR)] = jnp.maximum(acc, 0.0).astype(o_ref.dtype)


def _d2s_kernel_narrow(x_ref, s_ref, o_ref, *, r, H, W, cblk):
    """Fallback for small / unaligned W*r (e.g. W=16, r=2): accumulate all r*r
    one-hot terms and issue a single full-block store (avoids unaligned lane
    sub-slice stores).

    x_ref: (cblk, r, r, H, W);  s_ref: (r, r, W, r*r*W);  o_ref: (cblk*H, r*r*W)
    """
    M = cblk * H
    acc = None
    for i in range(r):
        for j in range(r):
            lhs = x_ref[:, i, j, :, :].reshape(M, W)
            if lhs.dtype != s_ref.dtype:
                lhs = lhs.astype(s_ref.dtype)
            term = jnp.dot(lhs, s_ref[i, j], preferred_element_type=jnp.float32)
            acc = term if acc is None else acc + term
    o_ref[...] = jnp.maximum(acc, 0.0).astype(o_ref.dtype)


# ------------------------- scatter constants ---------------------------------


def _scatter_wide(r, W, dtype):
    """S[j, w, q] = 1 iff q == w*r + j.  Shape (r, W, W*r) — r^2 smaller than
    the old (r, r, W, r*r*W) constant."""
    WR = W * r
    j = jnp.arange(r).reshape(r, 1, 1)
    w = jnp.arange(W).reshape(1, W, 1)
    q = jnp.arange(WR).reshape(1, 1, WR)
    return (q == w * r + j).astype(dtype)


def _scatter_narrow(r, W, dtype):
    """S[i, j, w, q] = 1 iff q == i*(W*r) + w*r + j.  Shape (r, r, W, r*r*W)."""
    Q = r * r * W
    i = jnp.arange(r).reshape(r, 1, 1, 1)
    j = jnp.arange(r).reshape(1, r, 1, 1)
    w = jnp.arange(W).reshape(1, 1, W, 1)
    q = jnp.arange(Q).reshape(1, 1, 1, Q)
    return (q == i * (W * r) + w * r + j).astype(dtype)


# ---------------------------- block sizing -----------------------------------


def _vmem_capacity_bytes():
    cap = 64 * 2 ** 20            # conservative default (v7x per-TensorCore VMEM)
    try:
        info = pltpu.get_tpu_info()
        cap = int(getattr(info, "vmem_capacity_bytes", cap))
    except Exception:
        pass
    return cap


def _pick_cblk(nc, r, H, W, Q, in_dtype, out_dtype, s_bytes, budget):
    """Choose how many (batch*out_channel) groups are processed per grid step.

    Accounts for BOTH double-buffered input and output blocks, the resident
    scatter constant (2 pipeline copies) and the f32 acc / matmul-result
    temporaries the unrolled body materializes.  Prefers an even grid length
    (megacore on v7x) and dtype-aware sublane alignment of the output block.
    """
    in_it = jnp.dtype(in_dtype).itemsize
    out_it = jnp.dtype(out_dtype).itemsize
    sub_in = _sublane(in_dtype)
    sub_out = _sublane(out_dtype)

    # VMEM-padded bytes per group
    in_pg = r * r * _round_up(H, sub_in) * _round_up(W, 128) * in_it
    out_pg = H * _round_up(Q, 128) * out_it
    tmp_pg = 2 * H * _round_up(Q, 128) * 4            # f32 acc + dot-result temps
    per_group = 2 * (in_pg + out_pg) + tmp_pg          # in & out double-buffered

    avail = max(budget - 2 * s_bytes, per_group)
    cmax = int(max(1, min(nc, avail // per_group)))

    best, best_even = 1, 0
    for d in range(1, nc + 1):
        if nc % d or d > cmax:
            continue
        if (d * H) % sub_out != 0 and d != nc:         # keep out block sublane-aligned
            continue
        best = max(best, d)
        g = nc // d
        if g >= 2 and g % 2 == 0:
            best_even = max(best_even, d)

    # Prefer an even grid (2 TensorCores on v7x) unless it more than halves the block.
    cblk = best_even if (best_even and 2 * best_even >= best) else best

    # nc with only tiny divisors (e.g. prime): allow a ragged last block instead
    # of collapsing to per-step-overhead-dominated tiny tiles.
    ragged = False
    if nc > cmax and cblk * 4 < cmax:
        c = cmax
        while c > 1 and (c * H) % sub_out != 0:
            c -= 1
        if c > cblk:
            cblk, ragged = c, True

    grid_len = int(pl.cdiv(nc, cblk)) if ragged else nc // cblk
    return cblk, grid_len, per_group


# ------------------------------ wrapper --------------------------------------


def depth_to_space(x, stride):
    """PixelShuffle(stride) + ReLU on an NCHW tensor, as a Pallas TPU kernel."""
    N, C, H, W = x.shape
    r = int(stride)
    assert C % (r * r) == 0, "channels must be divisible by stride**2"
    c_out = C // (r * r)
    nc = N * c_out
    Q = r * r * W
    WR = W * r

    # One-hot routing keeps values exact, so bf16 inputs can use the cheap bf16
    # MXU path (v6e/v7x); everything else runs in f32 (never downcast f32).
    mm_dtype = jnp.bfloat16 if x.dtype == jnp.bfloat16 else jnp.float32
    mm_it = jnp.dtype(mm_dtype).itemsize
    sub_mm = _sublane(mm_dtype)

    wide_s_bytes = r * _round_up(W, sub_mm) * _round_up(WR, 128) * mm_it
    narrow_s_bytes = r * r * _round_up(W, sub_mm) * _round_up(Q, 128) * mm_it
    # Use the aligned per-i formulation when sub-block stores are 128-aligned,
    # or when the narrow path's scatter constant would no longer be "small".
    use_wide = (WR % 128 == 0) or (narrow_s_bytes > 8 * 2 ** 20)
    s_bytes = wide_s_bytes if use_wide else narrow_s_bytes

    cap = _vmem_capacity_bytes()
    budget = int(cap * 0.45)                 # working set well under physical VMEM
    cblk, grid_len, per_group = _pick_cblk(
        nc, r, H, W, Q, x.dtype, x.dtype, s_bytes, budget)

    needed = 2 * s_bytes + cblk * per_group
    vmem_limit = int(min(int(cap * 0.9), max(needed * 3 // 2, 32 * 2 ** 20)))

    # Free reshape exposing the (i, j) sub-channels; (N, c_out) collapsed so
    # batch and channels can be blocked together.
    x7 = x.reshape(nc, r, r, H, W)

    if use_wide:
        S = _scatter_wide(r, W, mm_dtype)
        s_spec = pl.BlockSpec((r, W, WR), lambda g: (0, 0, 0))         # resident
        kernel = functools.partial(_d2s_kernel_wide, r=r, H=H, W=W, cblk=cblk)
        mm_cols = WR
    else:
        S = _scatter_narrow(r, W, mm_dtype)
        s_spec = pl.BlockSpec((r, r, W, Q), lambda g: (0, 0, 0, 0))    # resident
        kernel = functools.partial(_d2s_kernel_narrow, r=r, H=H, W=W, cblk=cblk)
        mm_cols = Q

    itemsize = jnp.dtype(x.dtype).itemsize
    out_view = pl.pallas_call(
        kernel,
        out_shape=jax.ShapeDtypeStruct((nc * H, Q), x.dtype),
        grid=(grid_len,),
        in_specs=[
            pl.BlockSpec((cblk, r, r, H, W), lambda g: (g, 0, 0, 0, 0)),
            s_spec,
        ],
        out_specs=pl.BlockSpec((cblk * H, Q), lambda g: (g, 0)),
        compiler_params=pltpu.CompilerParams(
            dimension_semantics=("parallel",),
            vmem_limit_bytes=vmem_limit),
        cost_estimate=pl.CostEstimate(
            flops=int(2 * nc * H * W * mm_cols * r * r),
            transcendentals=0,
            bytes_accessed=int(2 * N * C * H * W * itemsize + s_bytes)),
    )(x7, S)

    # Free metadata reshape back to the NCHW PixelShuffle output layout.
    return out_view.reshape(N, c_out, H * r, W * r)


# ----------------------------- reference -------------------------------------


def _reference(x, stride):
    """Pure-JAX reference matching torch.nn.PixelShuffle + ReLU."""
    N, C, H, W = x.shape
    r = stride
    c_out = C // (r * r)
    y = x.reshape(N, c_out, r, r, H, W)
    y = jnp.transpose(y, (0, 1, 4, 2, 5, 3))
    y = y.reshape(N, c_out, H * r, W * r)
    return jnp.maximum(y, 0.0)


if __name__ == "__main__":
    key = jax.random.PRNGKey(0)

    # Primary check: the module's small NCHW shape (narrow path, W*r < 128).
    stride = 2
    N, C, H, W = 2, 8, 16, 16                 # C = 2 * stride**2
    x = jax.random.normal(key, (N, C, H, W), dtype=jnp.float32)
    out = jax.block_until_ready(depth_to_space(x, stride))
    ref = _reference(x, stride)
    assert out.shape == (N, C // (stride * stride), H * stride, W * stride)
    assert jnp.allclose(out, ref, atol=1e-5, rtol=1e-5), "narrow-path mismatch"

    # Secondary check: exercises the aligned per-i path ((W*r) % 128 == 0).
    x2 = jax.random.normal(jax.random.PRNGKey(0), (1, 4, 8, 64), dtype=jnp.float32)
    out2 = jax.block_until_ready(depth_to_space(x2, 2))
    assert jnp.allclose(out2, _reference(x2, 2), atol=1e-5, rtol=1e-5), \
        "wide-path mismatch"

    print("KERNEL_OK")
</pallas_src>

<mosaic_0001>
module attributes {stable_mosaic.version = 11 : i64} {
  func.func @_d2s_kernel_narrow(%arg0: i32, %arg1: memref<2x2x2x16x16xf32, #tpu.memory_space<vmem>>, %arg2: memref<2x2x16x64xf32, #tpu.memory_space<vmem>>, %arg3: memref<32x64xf32, #tpu.memory_space<vmem>>) attributes {dimension_semantics = [#tpu.dimension_semantics<parallel>], iteration_bounds = array<i64: 2>, scalar_prefetch = 0 : i64, scratch_operands = 0 : i64, tpu.core_type = #tpu.core_type<tc>, window_params = [{transform_indices = @transform_0, window_bounds = array<i64: 2, 2, 2, 16, 16>}, {pipeline_mode = #tpu.pipeline_mode<synchronous>, transform_indices = @transform_1, window_bounds = array<i64: 2, 2, 16, 64>}, {transform_indices = @transform_2, window_bounds = array<i64: 32, 64>}]} {
    %c0 = arith.constant 0 : index
    %c0_0 = arith.constant 0 : index
    %c0_1 = arith.constant 0 : index
    %c0_2 = arith.constant 0 : index
    %c0_3 = arith.constant 0 : index
    %0 = vector.load %arg1[%c0, %c0_0, %c0_1, %c0_2, %c0_3] : memref<2x2x2x16x16xf32, #tpu.memory_space<vmem>>, vector<2x1x1x16x16xf32>
    %1 = vector.shape_cast %0 : vector<2x1x1x16x16xf32> to vector<2x16x16xf32>
    %2 = vector.shape_cast %1 : vector<2x16x16xf32> to vector<32x16xf32>
    %c0_4 = arith.constant 0 : index
    %c0_5 = arith.constant 0 : index
    %c0_6 = arith.constant 0 : index
    %c0_7 = arith.constant 0 : index
    %3 = vector.load %arg2[%c0_4, %c0_5, %c0_6, %c0_7] : memref<2x2x16x64xf32, #tpu.memory_space<vmem>>, vector<1x1x16x64xf32>
    %4 = vector.shape_cast %3 : vector<1x1x16x64xf32> to vector<16x64xf32>
    %cst = arith.constant dense<0.000000e+00> : vector<32x64xf32>
    %5 = tpu.matmul %2, %4, %cst {dimension_numbers = #tpu.dot_dimension_numbers<[1], [0], [0], [1], [0, 0, 1, 1], [], []>} : vector<32x16xf32>, vector<16x64xf32>, vector<32x64xf32> -> vector<32x64xf32>
    %c0_8 = arith.constant 0 : index
    %c0_9 = arith.constant 0 : index
    %c1 = arith.constant 1 : index
    %c0_10 = arith.constant 0 : index
    %c0_11 = arith.constant 0 : index
    %6 = vector.load %arg1[%c0_8, %c0_9, %c1, %c0_10, %c0_11] : memref<2x2x2x16x16xf32, #tpu.memory_space<vmem>>, vector<2x1x1x16x16xf32>
    %7 = vector.shape_cast %6 : vector<2x1x1x16x16xf32> to vector<2x16x16xf32>
    %8 = vector.shape_cast %7 : vector<2x16x16xf32> to vector<32x16xf32>
    %c0_12 = arith.constant 0 : index
    %c1_13 = arith.constant 1 : index
    %c0_14 = arith.constant 0 : index
    %c0_15 = arith.constant 0 : index
    %9 = vector.load %arg2[%c0_12, %c1_13, %c0_14, %c0_15] : memref<2x2x16x64xf32, #tpu.memory_space<vmem>>, vector<1x1x16x64xf32>
    %10 = vector.shape_cast %9 : vector<1x1x16x64xf32> to vector<16x64xf32>
    %cst_16 = arith.constant dense<0.000000e+00> : vector<32x64xf32>
    %11 = tpu.matmul %8, %10, %cst_16 {dimension_numbers = #tpu.dot_dimension_numbers<[1], [0], [0], [1], [0, 0, 1, 1], [], []>} : vector<32x16xf32>, vector<16x64xf32>, vector<32x64xf32> -> vector<32x64xf32>
    %12 = arith.addf %5, %11 : vector<32x64xf32>
    %c0_17 = arith.constant 0 : index
    %c1_18 = arith.constant 1 : index
    %c0_19 = arith.constant 0 : index
    %c0_20 = arith.constant 0 : index
    %c0_21 = arith.constant 0 : index
    %13 = vector.load %arg1[%c0_17, %c1_18, %c0_19, %c0_20, %c0_21] : memref<2x2x2x16x16xf32, #tpu.memory_space<vmem>>, vector<2x1x1x16x16xf32>
    %14 = vector.shape_cast %13 : vector<2x1x1x16x16xf32> to vector<2x16x16xf32>
    %15 = vector.shape_cast %14 : vector<2x16x16xf32> to vector<32x16xf32>
    %c1_22 = arith.constant 1 : index
    %c0_23 = arith.constant 0 : index
    %c0_24 = arith.constant 0 : index
    %c0_25 = arith.constant 0 : index
    %16 = vector.load %arg2[%c1_22, %c0_23, %c0_24, %c0_25] : memref<2x2x16x64xf32, #tpu.memory_space<vmem>>, vector<1x1x16x64xf32>
    %17 = vector.shape_cast %16 : vector<1x1x16x64xf32> to vector<16x64xf32>
    %cst_26 = arith.constant dense<0.000000e+00> : vector<32x64xf32>
    %18 = tpu.matmul %15, %17, %cst_26 {dimension_numbers = #tpu.dot_dimension_numbers<[1], [0], [0], [1], [0, 0, 1, 1], [], []>} : vector<32x16xf32>, vector<16x64xf32>, vector<32x64xf32> -> vector<32x64xf32>
    %19 = arith.addf %12, %18 : vector<32x64xf32>
    %c0_27 = arith.constant 0 : index
    %c1_28 = arith.constant 1 : index
    %c1_29 = arith.constant 1 : index
    %c0_30 = arith.constant 0 : index
    %c0_31 = arith.constant 0 : index
    %20 = vector.load %arg1[%c0_27, %c1_28, %c1_29, %c0_30, %c0_31] : memref<2x2x2x16x16xf32, #tpu.memory_space<vmem>>, vector<2x1x1x16x16xf32>
    %21 = vector.shape_cast %20 : vector<2x1x1x16x16xf32> to vector<2x16x16xf32>
    %22 = vector.shape_cast %21 : vector<2x16x16xf32> to vector<32x16xf32>
    %c1_32 = arith.constant 1 : index
    %c1_33 = arith.constant 1 : index
    %c0_34 = arith.constant 0 : index
    %c0_35 = arith.constant 0 : index
    %23 = vector.load %arg2[%c1_32, %c1_33, %c0_34, %c0_35] : memref<2x2x16x64xf32, #tpu.memory_space<vmem>>, vector<1x1x16x64xf32>
    %24 = vector.shape_cast %23 : vector<1x1x16x64xf32> to vector<16x64xf32>
    %cst_36 = arith.constant dense<0.000000e+00> : vector<32x64xf32>
    %25 = tpu.matmul %22, %24, %cst_36 {dimension_numbers = #tpu.dot_dimension_numbers<[1], [0], [0], [1], [0, 0, 1, 1], [], []>} : vector<32x16xf32>, vector<16x64xf32>, vector<32x64xf32> -> vector<32x64xf32>
    %26 = arith.addf %19, %25 : vector<32x64xf32>
    %cst_37 = arith.constant 0.000000e+00 : f32
    %27 = vector.broadcast %cst_37 : f32 to vector<32x64xf32>
    %28 = arith.maximumf %26, %27 : vector<32x64xf32>
    %c0_38 = arith.constant 0 : index
    %c0_39 = arith.constant 0 : index
    %29 = vector.load %arg3[%c0_38, %c0_39] : memref<32x64xf32, #tpu.memory_space<vmem>>, vector<32x64xf32>
    tpu.vector_store %arg3[%c0_38, %c0_39], %28 {strides = array<i32>} : memref<32x64xf32, #tpu.memory_space<vmem>>, vector<32x64xf32>,
    return
  }
  func.func @transform_0(%arg0: i32) -> (i32, i32, i32, i32, i32) {
    %c0_i32 = arith.constant 0 : i32
    %c0_i32_0 = arith.constant 0 : i32
    %c0_i32_1 = arith.constant 0 : i32
    %c0_i32_2 = arith.constant 0 : i32
    %c0_i32_3 = arith.constant 0 : i32
    return %arg0, %c0_i32, %c0_i32_0, %c0_i32_1, %c0_i32_2 : i32, i32, i32, i32, i32
  }
  func.func @transform_1(%arg0: i32) -> (i32, i32, i32, i32) {
    %c0_i32 = arith.constant 0 : i32
    %c0_i32_0 = arith.constant 0 : i32
    %c0_i32_1 = arith.constant 0 : i32
    %c0_i32_2 = arith.constant 0 : i32
    %c0_i32_3 = arith.constant 0 : i32
    return %c0_i32, %c0_i32_0, %c0_i32_1, %c0_i32_2 : i32, i32, i32, i32
  }
  func.func @transform_2(%arg0: i32) -> (i32, i32) {
    %c0_i32 = arith.constant 0 : i32
    %c0_i32_0 = arith.constant 0 : i32
    return %arg0, %c0_i32 : i32, i32
  }
}

</mosaic_0001>

<bundles_post_ra>
// kernel: tpu_custom_call.1
= control target key start
LH: loop header
LB: loop body
LE: loop exit
PB: predicated region body
PF: predicated region fallthrough
CT: control target
= control target key end

     0   :  { %7 = vsyncpa [#allocation3], 0  ;;  %s1312_s0 = inlined_call_operand.hbm [shape: f32[4,2,2,16,16], index: 0, kind: input, shape index: {}]   ;;  %s1313_s1 = inlined_call_operand.hbm [shape: f32[2,2,16,64], index: 1, kind: input, shape index: {}]   ;;  %s1314_s2 = inlined_call_operand.hbm [shape: f32[64,64], index: 2, kind: output, shape index: {}]  }
   0x1   :  { %9 = vsyncpa [#allocation3 + $0x1], 0 }
   0x2   :  { %10 = vsyncpa [#allocation6], 0 }
   0x3   :  { %11 = vsyncpa [#allocation4], 0 }
   0x4   :  { %13 = vsyncpa [#allocation4 + $0x1], 0  ;;  %s1066_s9 = smov 0   ;;  %s1068_s10 = smov 0  }
   0x5   :  { %s1070_s11 = smov 0   ;;  %s1072_s12 = smov 0  }
   0x6 LB: > { %s1087_s13 = sadd.s32 4294967295, %s1042_s12   ;;  %s713_s14 = sadd.s32 4294967294, %s1042_s12   ;;  %s1042_s12 = sphi %s1072_s12, %s1334_s12   ;;  %s1038_s11 = sphi %s1070_s11, %s1333_s11   ;;  %s1034_s10 = sphi %s1068_s10, %s1332_s10   ;;  %s1030_s9 = sphi %s1066_s9, %s1331_s9  }
   0x7   : > { %p39_p0 = scmp.ne.s32.totalorder %s1034_s10, %s1030_s9  ;;  %p1315_p1 = scmp.eq.s32.totalorder %s1087_s13, 0 }
   0x8   : > { %p90_p3 = scmp.eq.s32.totalorder %s713_s14, 1  ;;  %p714_p5 = scmp.ge.s32.totalorder %s1042_s12, 1 }
   0x9   : > { %p1096_p4 = por %p1315_p1, %p39_p0  ;;  %p97_p7 = scmp.lt.s32.totalorder %s1042_s12, 3 }
   0xa   : > { %p1101_p6 = por %p90_p3, %p39_p0  ;;  %s1044_s18 = smov [#allocation5]  }
   0xb   : > { %s1318_s15 = scalar_select %p1096_p4, 1, 0 }
   0xc   : > { %s1319_s16 = scalar_select %p1101_p6, 1, 0 }
   0xd   : > { %p1106_p8 = pnand %p714_p5, %p97_p7  ;;  %s109_s19 = sshll.u32 %s1044_s18, 4  ;;  %s1110_s19 = int_to_ptr.vmem [resolvable:$true] %s109_s19 }
   0xe   : > { %s1122_s21 = sadd.s32 1, %s1042_s12   ;;  %s26_s22 = sadd.s32 1, %s1038_s11 }
   0xf   : > { %s1320_s17 = scalar_select %p1106_p8, 1, 0 }
  0x10   : > { %p861_p9 = pneg %p1106_p8  ;;  %s23_s23 = ssub.s32 %s1042_s12, %s1122_s21 }
  0x11   : > { %s914_s26 = scalar_lea.hbm %s1313_s1, 1024 }
  0x12   : > { %p1117_p11 = pnand %p861_p9, %p1315_p1  ;;  %p915_p12 = scmp.ne.s32.totalorder %s1313_s1, %s914_s26 }
  0x13   : > { %p921_p5 = scmp.lt.u32.totalorder %s914_s26, %s1313_s1 }
  0x14   : > { %p916_p13 = pneg %p1117_p11 }
  0x16   : > { %p917_p0 = pnand %p916_p13, %p915_p12 }
  0x18   : > { %p918_p3 = pneg %p917_p0 }
  0x1a   : > { %p923_p7 = pnand %p921_p5, %p918_p3 }
  0x1c   : > { %926 = shalt.err (!%p923_p7)
}
  0x1d   : > { %s927_s3 = scalar_lea.vmem %s1110_s19, 1024  ;;  %p935_p2 = scmp.lt.s32.totalorder %s1110_s19, %s1110_s19 }
  0x1e   : > { %p928_p9 = scmp.ne.s32.totalorder %s1110_s19, %s927_s3  ;;  %p936_p6 = scmp.lt.s32.totalorder %s927_s3, %s927_s3 }
  0x20   : > { %p930_p10 = pnand %p928_p9, %p916_p13  ;;  %p937_p4 = por %p936_p6, %p935_p2 }
  0x22   : > { %p931_p1 = pneg %p930_p10 }
  0x24   : > { %p938_p8 = pnand %p937_p4, %p931_p1 }
  0x26   : > { %941 = shalt.err (!%p938_p8)
}
  0x27   : > { %s1045_s4 = smov 128   ;;  %s1046_s5 = smov 8  }
  0x28   : > { %864 = dma.hbm_to_vmem [thread:$0]  (!%p1117_p11), %s1313_s1, 1024, %s1110_s19, [#allocation6], %s1045_s4, %s1045_s4, %s1046_s5  }
  0x29   : > { %p24_p1 = scmp.eq.s32.totalorder %s23_s23, 0  ;;  %p33_p2 = scmp.ne.s32.totalorder %s1038_s11, %s1034_s10 }
  0x2a   : > { %p34_p4 = scmp.eq.s32.totalorder %s1042_s12, 0  ;;  %p874_p6 = scmp.lt.s32.totalorder %s1042_s12, 2 }
  0x2b   : > { %s1156_s8 = scalar_select %p24_p1, %s1038_s11, %s26_s22  }
  0x2c   : > { %p35_p8 = por %p34_p4, %p33_p2  ;;  %p1322_p10 = scmp.eq.s32.totalorder %s1087_s13, 1 }
  0x2d   : > { %s123_s18 = sand.u32 1, %s1038_s11   ;;  %s759_s20 = sshll.u32 %s1042_s12, 11 }
  0x2e   : > { %p1160_p12 = por %p1322_p10, %p33_p2  ;;  %s717_s24 = sshll.u32 %s123_s18, 7 }
  0x2f   : > { %s1169_s27 = scalar_lea.hbm %s1312_s0, %s759_s20  ;;  %s127_s19 = scalar_lea.vmem [#allocation2], %s717_s24 }
  0x30   : > { %s135_s22 = sshll.u32 %s127_s19, 4  ;;  %p1171_p11 = pnand %p874_p6, %p35_p8  ;;  %s1175_s22 = int_to_ptr.vmem [resolvable:$true] %s135_s22 }
  0x31   : > { %s1177_s28 = scalar_lea.sflag [#allocation3], %s123_s18  ;;  %s942_s29 = scalar_lea.hbm %s1169_s27, 2048 }
  0x32   : > { %p943_p13 = scmp.ne.s32.totalorder %s1169_s27, %s942_s29  ;;  %p944_p0 = pneg %p1171_p11 }
  0x33   : > { %s947_s6 = scalar_lea.hbm %s1312_s0, 4096  ;;  %p948_p7 = scmp.lt.u32.totalorder %s1169_s27, %s1312_s0 }
  0x34   : > { %p945_p3 = pnand %p944_p0, %p943_p13  ;;  %p949_p9 = scmp.lt.u32.totalorder %s947_s6, %s942_s29 }
  0x35   : > { %p951_p2 = scmp.lt.u32.totalorder %s942_s29, %s1169_s27 }
  0x36   : > { %p946_p5 = pneg %p945_p3  ;;  %p950_p1 = por %p949_p9, %p948_p7 }
  0x38   : > { %p952_p4 = por %p951_p2, %p950_p1 }
  0x3a   : > { %p953_p6 = pnand %p952_p4, %p946_p5 }
  0x3c   : > { %956 = shalt.err (!%p953_p6)
}
  0x3d   : > { %s957_s18 = scalar_lea.vmem %s1175_s22, 2048  ;;  %s1047_s24 = smov [#allocation2]  }
  0x3e   : > { %p958_p8 = scmp.ne.s32.totalorder %s1175_s22, %s957_s18  ;;  %s962_s25 = sshll.u32 %s1047_s24, 4  ;;  %s963_s25 = int_to_ptr.vmem [resolvable:$false] %s962_s25 }
  0x3f   : > { %s964_s26 = scalar_lea.vmem %s963_s25, 4096  ;;  %p965_p3 = scmp.lt.s32.totalorder %s1175_s22, %s963_s25 }
  0x40   : > { %p960_p10 = pnand %p958_p8, %p944_p0  ;;  %p966_p7 = scmp.lt.s32.totalorder %s964_s26, %s957_s18 }
  0x42   : > { %p961_p13 = pneg %p960_p10  ;;  %p967_p9 = por %p966_p7, %p965_p3 }
  0x44   : > { %p968_p1 = pnand %p967_p9, %p961_p13 }
  0x46   : > { %971 = shalt.err (!%p968_p1)
}
  0x47   : > { %868 = dma.hbm_to_vmem [thread:$0]  (!%p1171_p11), %s1169_s27, 2048, %s1175_s22, %s1177_s28, %s1045_s4, %s1045_s4, %s1046_s5  }
  0x48   : > { %p1325_p0 = scmp.ne.s32.totalorder %s1320_s17, 0 }
  0x49   : > { %s1211_s19 = sand.u32 (!%p1325_p0), 1, %s1034_s10   ;;  %p1326_p5 = scmp.ne.s32.totalorder (!%p1325_p0), %s1318_s15, 0 }
  0x4a   : > { %147 = sbr.rel (%p1325_p0) target bundleno = 337 (0x151), region = 28  ;;  %s722_s29 = sshll.u32 (!%p1325_p0), %s1211_s19, 7 }
  0x4b   : > { %s150_s30 = scalar_lea.sflag (!%p1325_p0), [#allocation3], %s1211_s19  ;;  %s1215_s3 = scalar_lea.vmem (!%p1325_p0), [#allocation2], %s722_s29 }
  0x51   : > { %1017 = dma.done.wait (%p1326_p5), %s150_s30, 2048  }
  0x52   : > { %1019 = vsyncadd (%p1326_p5), %s150_s30, 4294965248  ;;  %p1327_p11 = scmp.eq.s32.totalorder %s1087_s13, 0 }
  0x54   : > { %1021 = dma.done.wait (%p1327_p11), [#allocation6], 1024   ;;  %p1328_p2 = pmov %p1327_p11 }
  0x55   : > { %vm194_vm0 = vcmask 130048   ;;  %v192_v0 = vld [vmem:[#allocation5 + $0x10] sm:$0xff]  ;;  %v193_v1 = vld [vmem:[#allocation5 + $0x18] sm:$0xff]  ;;  %v395_v2 = vld [vmem:[#allocation5 + $0x20] sm:$0xff]  ;;  %s724_s15 = sshll.u32 %s1211_s19, 5  ;;  %vm611_vm1 = vcmask 523264  }
  0x56   : > { %1023 = vsyncadd (%p1328_p2), [#allocation6], 4294966272  ;;  %v825_v3 = vpack.c.bf16 %v193_v1, %v192_v0  ;;  %v396_v4 = vld [vmem:[#allocation5 + $0x28] sm:$0xff]  ;;  %v725_v5 = vld [vmem:[%s1215_s3 + $0x10] sm:$0xff]  ;;  %s177_s17 = scalar_lea.vmem [#allocation7], %s724_s15  ;;  %s760_s5 = sshll.u32 %s1087_s13, 9 }
  0x57   : > { %v737_v6 = vld [vmem:[%s1215_s3 + $0x20] sm:$0xff]  ;;  %v833_v7 = vpack.c.bf16 %v396_v4, %v395_v2  ;;  %789 = vmatprep.mubr.msk.f32.mxu1 %vm194_vm0, %v725_v5  ;;  %v185_v9 = vld [vmem:[#allocation5 + $0x8] sm:$0xff]  ;;  %v504_v11 = vld [vmem:[#allocation5 + $0x30] sm:$0xff]  ;;  %s630_s4 = sshll.u32 %s177_s17, 4  ;;  %s1266_s23 = scalar_lea.hbm %s1314_s2, %s760_s5  ;;  %s1260_s4 = int_to_ptr.vmem [resolvable:$true] %s630_s4 }
  0x58   : > { %809 = vmatprep.mubr.msk.f32.mxu0 %vm194_vm0, %v737_v6  ;;  %v184_v8 = vld [vmem:[#allocation5] sm:$0xff]  ;;  %826 = vmatprep.subr.bf16.mxu1 %v825_v3  ;;  %v505_v12 = vld [vmem:[#allocation5 + $0x38] sm:$0xff]  ;;  %v738_v15 = vld [vmem:[%s1215_s3 + $0x28] sm:$0xff]  ;;  %s617_s13 = scalar_lea.sflag [#allocation4], %s1211_s19  ;;  %s972_s28 = scalar_lea.vmem %s1260_s4, 512 }
  0x59   : > { %v829_v10 = vpack.c.bf16 %v185_v9, %v184_v8  ;;  %834 = vmatprep.subr.bf16.mxu0 %v833_v7  ;;  %828 = vmatpush3.bf16.msra.mxu1 %v825_v3  ;;  %v726_v13 = vld [vmem:[%s1215_s3 + $0x18] sm:$0xff]  ;;  %v837_v14 = vpack.c.bf16 %v505_v12, %v504_v11  ;;  %v727_v16 = vld [vmem:[%s1215_s3 + $0x50] sm:$0xff]  ;;  %v739_v17 = vld [vmem:[%s1215_s3 + $0x60] sm:$0xff]  ;;  %p973_p4 = scmp.ne.s32.totalorder %s1260_s4, %s972_s28  ;;  %s1048_s6 = smov [#allocation7]  }
  0x5a   : > { %836 = vmatpush3.bf16.msra.mxu0 %v833_v7  ;;  %v728_v18 = vld [vmem:[%s1215_s3 + $0x58] sm:$0xff]  ;;  %v740_v19 = vld [vmem:[%s1215_s3 + $0x68] sm:$0xff]  ;;  %v180_v20 = vld [vmem:[%s1215_s3] sm:$0xff]  ;;  %s976_s7 = sshll.u32 %s1048_s6, 4  ;;  %s977_s7 = int_to_ptr.vmem [resolvable:$false] %s976_s7 }
  0x5b   : > { %830 = vmatprep.subr.bf16.mxu1 %v829_v10  ;;  %838 = vmatprep.subr.bf16.mxu0 %v837_v14  ;;  %v745_v21 = vld [vmem:[%s1215_s3 + $0x30] sm:$0xff]  ;;  %v181_v22 = vld [vmem:[%s1215_s3 + $0x8] sm:$0xff]  ;;  %v746_v23 = vld [vmem:[%s1215_s3 + $0x38] sm:$0xff]  ;;  %p974_p6 = pnand %p973_p4, %p1160_p12  ;;  %s978_s20 = scalar_lea.vmem %s977_s7, 1024 }
  0x5c   : > { %790 = vmatmul.mubr.msk.f32.vlgmr.msra.gmra.mrb[0].mxu1 %vm194_vm0, %v726_v13  ;;  %v182_v24 = vld [vmem:[%s1215_s3 + $0x40] sm:$0xff]  ;;  %v747_v25 = vld [vmem:[%s1215_s3 + $0x70] sm:$0xff]  ;;  %v183_v26 = vld [vmem:[%s1215_s3 + $0x48] sm:$0xff]  ;;  %p979_p10 = scmp.lt.s32.totalorder %s1260_s4, %s977_s7  ;;  %p980_p13 = scmp.lt.s32.totalorder %s978_s20, %s972_s28 }
  0x5d   : > { %810 = vmatmul.mubr.msk.f32.vlgmr.msra.gmra.mrb[0].mxu0 %vm194_vm0, %v738_v15  ;;  %832 = vmatpush3.bf16.msra.mxu1 %v829_v10  ;;  %v748_v27 = vld [vmem:[%s1215_s3 + $0x78] sm:$0xff]  ;;  %p975_p8 = pneg %p974_p6 }
  0x5e   : > { %840 = vmatpush3.bf16.msra.mxu0 %v837_v14  ;;  %792 = vmatprep.mubr.msk.f32.mxu1 %vm194_vm0, %v727_v16  ;;  %p981_p3 = por %p980_p13, %p979_p10 }
  0x5f   : > { %812 = vmatprep.mubr.msk.f32.mxu0 %vm194_vm0, %v739_v17 }
  0x60   : > { %793 = vmatmul.mubr.msk.f32.gmra.mrb[2].mxu1 %vm194_vm0, %v728_v18  ;;  %p982_p7 = pnand %p981_p3, %p975_p8 }
  0x61   : > { %813 = vmatmul.mubr.msk.f32.gmra.mrb[2].mxu0 %vm194_vm0, %v740_v19  ;;  %799 = vmatprep.mubr.msk.f32.mxu1 %vm194_vm0, %v180_v20 }
  0x62   : > { %819 = vmatprep.mubr.msk.f32.mxu0 %vm194_vm0, %v745_v21 }
  0x64   : > { %800 = vmatmul.mubr.msk.f32.vlgmr.msra.gmra.mrb[0].mxu1 %vm194_vm0, %v181_v22 }
  0x65   : > { %820 = vmatmul.mubr.msk.f32.vlgmr.msra.gmra.mrb[0].mxu0 %vm194_vm0, %v746_v23  ;;  %802 = vmatprep.mubr.msk.f32.mxu1 %vm194_vm0, %v182_v24 }
  0x66   : > { %822 = vmatprep.mubr.msk.f32.mxu0 %vm194_vm0, %v747_v25 }
  0x68   : > { %803 = vmatmul.mubr.msk.f32.gmra.mrb[2].mxu1 %vm194_vm0, %v183_v26 }
  0x69   : > { %823 = vmatmul.mubr.msk.f32.gmra.mrb[2].mxu0 %vm194_vm0, %v748_v27 }
 0x137   : > { %v801_v28 = vpop.f32.mrb[0].mxu1 }
 0x138   : > { %v821_v29 = vpop.f32.mrb[0].mxu0  ;;  %v370_v30 = vpop.f32.mrb[1].mxu1 }
 0x139   : > { %v841_v31 = vadd.f32 %v821_v29, %v801_v28  ;;  %v584_v32 = vpop.f32.mrb[1].mxu0 }
 0x13a   : > { %v842_v33 = vadd.f32 %v584_v32, %v370_v30 }
 0x13b   : > { %v608_v34 = vmax.f32 %v841_v31, 0.0  ;;  %v804_v35 = vpop.f32.mrb[2].mxu1 }
 0x13c   : > { %v607_v36 = vmax.f32 %v842_v33, 0.0  ;;  %v824_v37 = vpop.f32.mrb[2].mxu0  ;;  %v380_v38 = vpop.f32.mrb[3].mxu1 }
 0x13d   : > { %613 = vst.msk [vmem:[%s177_s17 + $0x8] sm:$0xff] %vm611_vm1, %v608_v34  ;;  %v843_v39 = vadd.f32 %v824_v37, %v804_v35  ;;  %v594_v40 = vpop.f32.mrb[3].mxu0 }
 0x13e   : > { %612 = vst.msk [vmem:[%s177_s17] sm:$0xff] %vm611_vm1, %v607_v36  ;;  %v844_v41 = vadd.f32 %v594_v40, %v380_v38 }
 0x13f   : > { %v610_v42 = vmax.f32 %v843_v39, 0.0 }
 0x140   : > { %v609_v43 = vmax.f32 %v844_v41, 0.0 }
 0x141   : > { %615 = vst.msk [vmem:[%s177_s17 + $0x18] sm:$0xff] %vm611_vm1, %v610_v42 }
 0x142   : > { %614 = vst.msk [vmem:[%s177_s17 + $0x10] sm:$0xff] %vm611_vm1, %v609_v43 }
 0x143   : > { %985 = shalt.err (!%p982_p7)
}
 0x144   : > { %s986_s18 = scalar_lea.hbm %s1266_s23, 512  ;;  %s990_s26 = scalar_lea.hbm %s1314_s2, 1024 }
 0x145   : > { %p987_p9 = scmp.ne.s32.totalorder %s1266_s23, %s986_s18  ;;  %p991_p5 = scmp.lt.u32.totalorder %s1266_s23, %s1314_s2 }
 0x146   : > { %p992_p11 = scmp.lt.u32.totalorder %s990_s26, %s986_s18  ;;  %p994_p4 = scmp.lt.u32.totalorder %s986_s18, %s1266_s23 }
 0x147   : > { %p988_p1 = pnand %p987_p9, %p1160_p12 }
 0x148   : > { %p993_p2 = por %p992_p11, %p991_p5 }
 0x149   : > { %p989_p0 = pneg %p988_p1 }
 0x14a   : > { %p995_p6 = por %p994_p4, %p993_p2 }
 0x14c   : > { %p996_p8 = pnand %p995_p6, %p989_p0 }
 0x14e   : > { %999 = shalt.err (!%p996_p8)
}
 0x14f   : > { %s1049_s3 = smov 128   ;;  %s1050_s15 = smov 8  }
 0x150   : > { %859 = dma.vmem_to_hbm [thread:$0]  (%p1160_p12), %s1260_s4, 512, %s1266_s23, %s617_s13, %s1049_s3, %s1049_s3, %s1050_s15  }
 0x151 PF: > { %s645_s17 = sand.u32 1, %s1030_s9   ;;  %p1329_p10 = scmp.ne.s32.totalorder %s1319_s16, 0 }
 0x152   : > { %p1330_p13 = scmp.ge.s32.totalorder %s1042_s12, 2  ;;  %s646_s5 = scalar_lea.sflag [#allocation4], %s645_s17 }
 0x154   : > { %p870_p3 = pnand %p1330_p13, %p1329_p10 }
 0x156   : > { %1025 = dma.done.wait (!%p870_p3), %s646_s5, 512  }
 0x157   : > { %1027 = vsyncadd (!%p870_p3), %s646_s5, 4294966784  ;;  %p16_p7 = scmp.ge.s32.totalorder %s1122_s21, 4   ;;  %s1331_s9 = smov %s1034_s10 }
 0x158   : > { %s1332_s10 = smov %s1038_s11  ;;  %s1333_s11 = smov %s1156_s8 }
 0x159   : > { %s1334_s12 = smov %s1122_s21  ;;  %18 = sbr.rel (!%p16_p7) target bundleno = 6 (0x6), region = 83 }
 0x160   :  { %651 = vsyncpa [#allocation3], 1 }
 0x161   :  { %653 = vsyncpa [#allocation3 + $0x1], 1 }
 0x162   :  { %654 = vsyncpa [#allocation6], 1 }
 0x163   :  { %655 = vsyncpa [#allocation4], 1 }
 0x164   :  { %657 = vsyncpa [#allocation4 + $0x1], 1 }

</bundles_post_ra>
